<compile_context>
chip_gen: v6e
topology: v6e:2x2x1
jax: 0.10.0
libtpu: 0.0.40
codegen_flags: <defaults>
</compile_context>

<pallas_src>
import functools

import jax
import jax.numpy as jnp
import numpy as np
from jax.experimental import pallas as pl
from jax.experimental.pallas import tpu as pltpu


def _pairs(num_fields):
    return [(i, j) for i in range(num_fields) for j in range(i + 1, num_fields)]


def _interaction_kernel(x_ref, o_ref, *, num_fields, emb_dim):
    # x_ref: (TB, F*E) float VMEM block (fields concatenated along lanes)
    # o_ref: (TB, P*E) float VMEM block (pair products, lane-dense)
    xv = x_ref[...]
    prods = []
    for i, j in _pairs(num_fields):
        a = xv[:, i * emb_dim:(i + 1) * emb_dim]
        b = xv[:, j * emb_dim:(j + 1) * emb_dim]
        prods.append(a * b)
    o_ref[...] = jnp.concatenate(prods, axis=-1)   # one dense store per tile


def feature_interaction(x, *, block_b=512):
    """Pallas equivalent of FeatureInteraction.forward for x of shape (B, F, E)."""
    B, F, E = x.shape
    P = F * (F - 1) // 2
    TB = min(block_b, B)

    x_flat = x.reshape(B, F * E)                   # lane-dense input slab
    kernel = functools.partial(_interaction_kernel, num_fields=F, emb_dim=E)

    out_flat = pl.pallas_call(
        kernel,
        out_shape=jax.ShapeDtypeStruct((B, P * E), x.dtype),
        grid=(pl.cdiv(B, TB),),
        in_specs=[pl.BlockSpec((TB, F * E), lambda b: (b, 0))],
        out_specs=pl.BlockSpec((TB, P * E), lambda b: (b, 0)),
        compiler_params=pltpu.CompilerParams(
            dimension_semantics=("parallel",),     # independent batch tiles
        ),
    )(x_flat)
    return out_flat.reshape(B, P, E)


def _reference(x):
    F = x.shape[1]
    one = [i for i in range(F) for _ in range(i + 1, F)]
    two = [j for i in range(F) for j in range(i + 1, F)]
    return x[:, one, :] * x[:, two, :]


if __name__ == "__main__":
    key = jax.random.PRNGKey(0)
    k1, k2 = jax.random.split(key)

    # Small shapes consistent with the module's usual use (embedded fields).
    B, F, E = 2, 4, 32
    x = jax.random.normal(k1, (B, F, E), dtype=jnp.float32)

    out = jax.block_until_ready(feature_interaction(x))
    np.testing.assert_allclose(np.asarray(out), np.asarray(_reference(x)),
                               rtol=0, atol=0)

    # Also exercise a multi-step, batch-tiled grid.
    B2 = 16
    x2 = jax.random.normal(k2, (B2, F, E), dtype=jnp.float32)
    out2 = jax.block_until_ready(feature_interaction(x2, block_b=8))
    np.testing.assert_allclose(np.asarray(out2), np.asarray(_reference(x2)),
                               rtol=0, atol=0)

    print("KERNEL_OK")
</pallas_src>

<mosaic_0001>
module attributes {stable_mosaic.version = 11 : i64} {
  func.func @_interaction_kernel(%arg0: i32, %arg1: memref<2x128xf32, #tpu.memory_space<vmem>>, %arg2: memref<2x192xf32, #tpu.memory_space<vmem>>) attributes {dimension_semantics = [#tpu.dimension_semantics<parallel>], iteration_bounds = array<i64: 1>, scalar_prefetch = 0 : i64, scratch_operands = 0 : i64, tpu.core_type = #tpu.core_type<tc>, window_params = [{transform_indices = @transform_0, window_bounds = array<i64: 2, 128>}, {transform_indices = @transform_1, window_bounds = array<i64: 2, 192>}]} {
    %c0 = arith.constant 0 : index
    %c0_0 = arith.constant 0 : index
    %0 = vector.load %arg1[%c0, %c0_0] : memref<2x128xf32, #tpu.memory_space<vmem>>, vector<2x128xf32>
    %1 = vector.extract_strided_slice %0 {offsets = [0, 0], sizes = [2, 32], strides = [1, 1]} : vector<2x128xf32> to vector<2x32xf32>
    %2 = vector.extract_strided_slice %0 {offsets = [0, 32], sizes = [2, 32], strides = [1, 1]} : vector<2x128xf32> to vector<2x32xf32>
    %3 = arith.mulf %1, %2 : vector<2x32xf32>
    %4 = vector.extract_strided_slice %0 {offsets = [0, 0], sizes = [2, 32], strides = [1, 1]} : vector<2x128xf32> to vector<2x32xf32>
    %5 = vector.extract_strided_slice %0 {offsets = [0, 64], sizes = [2, 32], strides = [1, 1]} : vector<2x128xf32> to vector<2x32xf32>
    %6 = arith.mulf %4, %5 : vector<2x32xf32>
    %7 = vector.extract_strided_slice %0 {offsets = [0, 0], sizes = [2, 32], strides = [1, 1]} : vector<2x128xf32> to vector<2x32xf32>
    %8 = vector.extract_strided_slice %0 {offsets = [0, 96], sizes = [2, 32], strides = [1, 1]} : vector<2x128xf32> to vector<2x32xf32>
    %9 = arith.mulf %7, %8 : vector<2x32xf32>
    %10 = vector.extract_strided_slice %0 {offsets = [0, 32], sizes = [2, 32], strides = [1, 1]} : vector<2x128xf32> to vector<2x32xf32>
    %11 = vector.extract_strided_slice %0 {offsets = [0, 64], sizes = [2, 32], strides = [1, 1]} : vector<2x128xf32> to vector<2x32xf32>
    %12 = arith.mulf %10, %11 : vector<2x32xf32>
    %13 = vector.extract_strided_slice %0 {offsets = [0, 32], sizes = [2, 32], strides = [1, 1]} : vector<2x128xf32> to vector<2x32xf32>
    %14 = vector.extract_strided_slice %0 {offsets = [0, 96], sizes = [2, 32], strides = [1, 1]} : vector<2x128xf32> to vector<2x32xf32>
    %15 = arith.mulf %13, %14 : vector<2x32xf32>
    %16 = vector.extract_strided_slice %0 {offsets = [0, 64], sizes = [2, 32], strides = [1, 1]} : vector<2x128xf32> to vector<2x32xf32>
    %17 = vector.extract_strided_slice %0 {offsets = [0, 96], sizes = [2, 32], strides = [1, 1]} : vector<2x128xf32> to vector<2x32xf32>
    %18 = arith.mulf %16, %17 : vector<2x32xf32>
    %19 = tpu.concatenate %3, %6, %9, %12, %15, %18 in 1 : vector<2x32xf32>, vector<2x32xf32>, vector<2x32xf32>, vector<2x32xf32>, vector<2x32xf32>, vector<2x32xf32> -> vector<2x192xf32>
    %c0_1 = arith.constant 0 : index
    %c0_2 = arith.constant 0 : index
    %20 = vector.load %arg2[%c0_1, %c0_2] : memref<2x192xf32, #tpu.memory_space<vmem>>, vector<2x192xf32>
    tpu.vector_store %arg2[%c0_1, %c0_2], %19 {strides = array<i32>} : memref<2x192xf32, #tpu.memory_space<vmem>>, vector<2x192xf32>,
    return
  }
  func.func @transform_0(%arg0: i32) -> (i32, i32) {
    %c0_i32 = arith.constant 0 : i32
    %c0_i32_0 = arith.constant 0 : i32
    return %arg0, %c0_i32 : i32, i32
  }
  func.func @transform_1(%arg0: i32) -> (i32, i32) {
    %c0_i32 = arith.constant 0 : i32
    %c0_i32_0 = arith.constant 0 : i32
    return %arg0, %c0_i32 : i32, i32
  }
}

</mosaic_0001>

<bundles_post_ra>
// kernel: tpu_custom_call.1
= control target key start
LH: loop header
LB: loop body
LE: loop exit
PB: predicated region body
PF: predicated region fallthrough
CT: control target
= control target key end

     0   :  { %6 = vsyncpa [#allocation3], 0  ;;  %s162_s0 = inlined_call_operand.hbm [shape: f32[2,128], index: 0, kind: input, shape index: {}]   ;;  %s163_s1 = inlined_call_operand.hbm [shape: f32[2,192], index: 1, kind: output, shape index: {}]  }
   0x1   :  { %7 = vsyncpa [#allocation4], 0  ;;  %s140_s6 = smov [#allocation2]  }
   0x2   :  { %s14_s7 = sshll.u32 %s140_s6, 4  ;;  %s15_s7 = int_to_ptr.vmem [resolvable:$true] %s14_s7 }
   0x3   :  { %s104_s8 = scalar_lea.vmem %s15_s7, 32  ;;  %p109_p1 = scmp.lt.s32.totalorder %s15_s7, %s15_s7 }
   0x4   :  { %p105_p0 = scmp.ne.s32.totalorder %s15_s7, %s104_s8  ;;  %p110_p2 = scmp.lt.s32.totalorder %s104_s8, %s104_s8 }
   0x6   :  { %p111_p3 = por %p110_p2, %p109_p1 }
   0x8   :  { %p112_p4 = pnand %p111_p3, %p105_p0 }
   0xa   :  { %115 = shalt.err (!%p112_p4)
}
   0xb   :  { %17 = dma.hbm_to_vmem [thread:$0]  %s162_s0, 32, %s15_s7, [#allocation3]  }
   0xc   :  { %136 = dma.done.wait [#allocation3], 32  }
   0xd   :  { %137 = vsyncadd [#allocation3], 4294967264  ;;  %v21_v0 = vld [vmem:[#allocation2] sm:$0x3]  ;;  %s141_s11 = smov 64   ;;  %s142_s12 = smov 96   ;;  %v66_v10 = vlaneseq }
   0xe   :  { %27 = vrot.lane.b32.xlu0 %v21_v0, %s141_s11  ;;  %23 = vrot.lane.b32.xlu1 %v21_v0, %s142_s12  ;;  %s143_s13 = smov 32   ;;  %v144_v8 = vmov 1983009808   ;;  %vm53_vm0 = vcmask 261120   ;;  %vm55_vm1 = vcmask 523264   ;;  %vm57_vm2 = vcmask 785408  }
   0xf   :  { %v64_v9 = vunpack.c.l.s4 %v144_v8  ;;  %v67_v14 = vshrl.u32 %v66_v10, 7  ;;  %vm71_vm3 = vcmask 1041408   ;;  %vm72_vm4 = vcmask 519170   ;;  %s145_s0 = smov [#allocation5]  }
  0x10   :  { %s81_s14 = sshll.u32 %s145_s0, 4  ;;  %vm73_vm5 = vmor %vm72_vm4, %vm71_vm3  ;;  %s82_s14 = int_to_ptr.vmem [resolvable:$true] %s81_s14 }
  0x11   :  { %v65_v13 = vunpack.c.0.s8 %v64_v9  ;;  %s116_s15 = scalar_lea.vmem %s82_s14, 64  ;;  %p121_p6 = scmp.lt.s32.totalorder %s82_s14, %s82_s14 }
  0x12   :  { %31 = vrot.lane.b32.xlu0 %v21_v0, %s143_s13  ;;  %p117_p5 = scmp.ne.s32.totalorder %s82_s14, %s116_s15  ;;  %p122_p7 = scmp.lt.s32.totalorder %s116_s15, %s116_s15 }
  0x13   :  { %v68_v18 = vsub.s32 %v65_v13, %v67_v14 }
  0x14   :  { %p123_p8 = por %p122_p7, %p121_p6 }
  0x16   :  { %p124_p9 = pnand %p123_p8, %p117_p5 }
  0x80   :  { %v28_v1 = vpop.permute.xlu0 %27  ;;  %v24_v2 = vpop.permute.xlu1 %23 }
  0x81   :  { %v30_v3 = vmul.f32 %v28_v1, %v21_v0  ;;  %v26_v4 = vmul.f32 %v24_v2, %v21_v0 }
  0x83   :  { %36 = vrot.lane.b32.xlu1 %v30_v3, %s143_s13 }
  0x84   :  { %v32_v5 = vpop.permute.xlu0 %31 }
  0x85   :  { %v34_v6 = vmul.f32 %v32_v5, %v21_v0 }
  0x87   :  { %44 = vrot.lane.b32.xlu1 %v26_v4, %s141_s11  ;;  %40 = vrot.lane.b32.xlu0 %v34_v6, %s141_s11 }
  0x8b   :  { %50 = vrot.lane.b32.xlu1 %v26_v4, %s142_s12  ;;  %47 = vrot.lane.b32.xlu0 %v30_v3, %s142_s12 }
  0xf5   :  { %v37_v7 = vpop.permute.xlu1 %36 }
  0xf6   :  { %v54_v15 = vsel %vm53_vm0, %v26_v4, %v37_v7 }
  0xf9   :  { %v45_v11 = vpop.permute.xlu1 %44  ;;  %v41_v12 = vpop.permute.xlu0 %40 }
  0xfa   :  { %v56_v16 = vsel %vm55_vm1, %v54_v15, %v41_v12 }
  0xfb   :  { %v58_v20 = vsel %vm57_vm2, %v56_v16, %v45_v11 }
  0xfd   :  { %v51_v17 = vpop.permute.xlu1 %50  ;;  %v48_v19 = vpop.permute.xlu0 %47 }
  0xfe   :  { %v59_v21 = vsel %vm53_vm0, %v48_v19, %v51_v17 }
  0xff   :  { %v62_v22 = vcombine.low %v58_v20, %v59_v21 }
 0x101   :  { %v69_v23 = vrot.slane %v62_v22, %v68_v18 }
 0x103   :  { %74 = vst.msk [vmem:[#allocation5] sm:$0xf] %vm73_vm5, %v69_v23 }
 0x104   :  { %127 = shalt.err (!%p124_p9)
}
 0x105   :  { %84 = dma.vmem_to_hbm [thread:$0]  %s82_s14, 64, %s163_s1, [#allocation4]  }
 0x106   :  { %138 = dma.done.wait [#allocation4], 64  }
 0x107   :  { %139 = vsyncadd [#allocation4], 4294967232 }
 0x108   :  { %88 = vsyncpa [#allocation3], 1 }
 0x109   :  { %89 = vsyncpa [#allocation4], 1 }

</bundles_post_ra>
